<compile_context>
chip_gen: v7x
topology: tpu7x:2x2x1
jax: 0.10.0
libtpu: 0.0.40
codegen_flags: <defaults>
</compile_context>

<pallas_src>
import functools

import jax
import jax.numpy as jnp
from jax.experimental import pallas as pl
from jax.experimental.pallas import tpu as pltpu

LANE = 128


def _round_up(x, m):
    return (x + m - 1) // m * m


def _choose_tile_b(batch, align, *, max_tile=512, target_grid=4, min_tile=64):
    """Pick the batch tile.

    Small acting batches -> one small tile (lowest latency, no wasted rows).
    Larger batches       -> up to `max_tile` rows while aiming for at least
                            `target_grid` grid steps (>=2 per TC on v7x).
    """
    b_al = _round_up(max(batch, 1), align)
    if b_al <= min_tile:
        return b_al
    tile = _round_up(pl.cdiv(b_al, target_grid), align)
    return max(min(tile, max_tile), min_tile)


def policy_mlp_kernel(obs_ref, w1_ref, b1_ref, w2_ref, b2_ref,
                      wh_ref, bh_ref, out_ref):
    """Fused actor-critic MLP forward on one batch tile.

    h1  = tanh(obs @ W1 + b1)
    h2  = tanh(h1  @ W2 + b2)
    out = h2 @ [Wa | Wv] + [ba | bv]     (single lane-dense head matmul/store)
    """
    cd = w2_ref.dtype                       # trunk/head operand dtype (f32/bf16)
    x = obs_ref[...].astype(w1_ref.dtype)   # (tile_b, obs_dim), no lane padding

    h1 = jnp.tanh(
        jnp.dot(x, w1_ref[...], preferred_element_type=jnp.float32)
        + b1_ref[...])
    h2 = jnp.tanh(
        jnp.dot(h1.astype(cd), w2_ref[...], preferred_element_type=jnp.float32)
        + b2_ref[...])

    out = (jnp.dot(h2.astype(cd), wh_ref[...],
                   preferred_element_type=jnp.float32)
           + bh_ref[...])
    out_ref[...] = out.astype(out_ref.dtype)


def pack_params(params, compute_dtype=jnp.bfloat16):
    """Fuse the actor/critic heads, pad hidden/head dims to 128 lanes, and
    pre-cast the bulk weights (W2, [Wa|Wv]) to `compute_dtype` ONCE.

    Zero padding is numerically exact: padded hidden units get zero
    weight+bias -> tanh(0)=0 -> contribute nothing downstream; padded head
    columns are zero and get sliced off in the wrapper.  W1 keeps its exact
    obs_dim rows and stays f32 (tiny; obs arrives f32).
    """
    (w1, b1, w2, b2, wa, ba, wv, bv) = params
    obs_dim, hidden_dim = w1.shape
    action_dim = wa.shape[1]

    hid_p = _round_up(hidden_dim, LANE)
    head_p = _round_up(action_dim + 1, LANE)
    # NOTE: if hidden_dim is ever scaled up, pad to 256 on v6e/v7x (MXU-native).

    def pad2(a, rows, cols, dtype):
        a = a.astype(dtype)
        return jnp.pad(a, ((0, rows - a.shape[0]), (0, cols - a.shape[1])))

    wh = jnp.concatenate([wa, wv], axis=1)   # (hidden, action_dim + 1)
    bh = jnp.concatenate([ba, bv], axis=1)

    packed = (pad2(w1, obs_dim, hid_p, jnp.float32),   # W1: f32, rows unpadded
              pad2(b1, 1, hid_p, jnp.float32),
              pad2(w2, hid_p, hid_p, compute_dtype),
              pad2(b2, 1, hid_p, jnp.float32),
              pad2(wh, hid_p, head_p, compute_dtype),
              pad2(bh, 1, head_p, jnp.float32))
    return packed, action_dim


@functools.partial(jax.jit, static_argnames=("action_dim", "tile_b"))
def policy_forward(obs, packed, *, action_dim, tile_b=None):
    """Batch-tiled fused forward.  Returns (logits (B, A), value (B, 1))."""
    w1, b1, w2, b2, wh, bh = packed
    batch, obs_dim = obs.shape
    hid_p = w1.shape[1]
    head_p = wh.shape[1]

    # Sublane alignment: 8 for f32 obs, 16 for bf16 obs.
    align = 16 if obs.dtype == jnp.bfloat16 else 8
    if tile_b is None:
        tile_b = _choose_tile_b(batch, align)

    n_blocks = pl.cdiv(batch, tile_b)
    b_pad = n_blocks * tile_b
    if b_pad != batch:                       # cheap row-only pad (often a no-op)
        obs = jnp.pad(obs, ((0, b_pad - batch), (0, 0)))

    # Weights/biases: constant index_map -> DMA'd once, VMEM-resident across
    # the whole grid.  (If hidden_dim scales, add pipeline_mode=pl.Buffered(1)
    # here to halve resident-weight VMEM on v7x.)
    resident = lambda i: (0, 0)
    grid_spec = pltpu.PrefetchScalarGridSpec(
        num_scalar_prefetch=0,
        grid=(n_blocks,),
        in_specs=[
            pl.BlockSpec((tile_b, obs_dim), lambda i: (i, 0)),  # obs (pipelined)
            pl.BlockSpec((obs_dim, hid_p), resident),           # W1
            pl.BlockSpec((1, hid_p), resident),                 # b1
            pl.BlockSpec((hid_p, hid_p), resident),             # W2
            pl.BlockSpec((1, hid_p), resident),                 # b2
            pl.BlockSpec((hid_p, head_p), resident),            # [Wa | Wv]
            pl.BlockSpec((1, head_p), resident),                # [ba | bv]
        ],
        out_specs=pl.BlockSpec((tile_b, head_p), lambda i: (i, 0)),
    )

    out = pl.pallas_call(
        policy_mlp_kernel,
        out_shape=jax.ShapeDtypeStruct((b_pad, head_p), jnp.float32),
        grid_spec=grid_spec,
        compiler_params=pltpu.CompilerParams(
            dimension_semantics=("parallel",),   # v7x: shard batch over 2 TCs
            vmem_limit_bytes=32 * 1024 * 1024,
        ),
    )(obs, w1, b1, w2, b2, wh, bh)

    # Slice off batch padding and zero-padded head lanes BEFORE any
    # softmax/sampling (padded lanes would otherwise corrupt the distribution).
    logits = out[:batch, :action_dim]
    value = out[:batch, action_dim:action_dim + 1]
    return logits, value


def init_params(key, obs_dim, hidden_dim, action_dim):
    """Deterministic synthetic parameter init (matches nn.Linear shapes)."""
    ks = jax.random.split(key, 8)

    def lin(kw, kb, fan_in, fan_out):
        bound = 1.0 / jnp.sqrt(fan_in)
        w = jax.random.uniform(kw, (fan_in, fan_out), jnp.float32, -bound, bound)
        b = jax.random.uniform(kb, (1, fan_out), jnp.float32, -bound, bound)
        return w, b

    w1, b1 = lin(ks[0], ks[1], obs_dim, hidden_dim)
    w2, b2 = lin(ks[2], ks[3], hidden_dim, hidden_dim)
    wa, ba = lin(ks[4], ks[5], hidden_dim, action_dim)
    wv, bv = lin(ks[6], ks[7], hidden_dim, 1)
    return (w1, b1, w2, b2, wa, ba, wv, bv)


def reference_forward(obs, params):
    """Pure-JAX reference for correctness checking (unpadded, unfused)."""
    (w1, b1, w2, b2, wa, ba, wv, bv) = params
    h1 = jnp.tanh(obs @ w1 + b1)
    h2 = jnp.tanh(h1 @ w2 + b2)
    return h2 @ wa + ba, h2 @ wv + bv


if __name__ == "__main__":
    key = jax.random.PRNGKey(0)
    k_obs, k_obs2, k_par = jax.random.split(key, 3)

    # Small, non-lane-aligned dims to exercise padding + fused-head + tiling.
    obs_dim, hidden_dim, action_dim = 24, 64, 6
    params = init_params(k_par, obs_dim, hidden_dim, action_dim)

    packed_f32, a_dim = pack_params(params, compute_dtype=jnp.float32)
    packed_bf16, _ = pack_params(params)   # default: bf16 trunk/head weights

    ok = True
    # Case 1: batch=200 -> multi-step grid (adaptive tile, 4 steps).
    # Case 2: tiny RL acting batch=8 -> single 8-row tile (no 128-row padding).
    for k, batch in ((k_obs, 200), (k_obs2, 8)):
        obs = jax.random.normal(k, (batch, obs_dim), dtype=jnp.float32)
        ref_logits, ref_value = reference_forward(obs, params)

        for packed, tol in ((packed_f32, 1e-4), (packed_bf16, 5e-2)):
            logits, value = policy_forward(obs, packed, action_dim=a_dim)
            jax.block_until_ready((logits, value))

            ok &= logits.shape == (batch, action_dim)
            ok &= value.shape == (batch, 1)
            ok &= bool(jnp.allclose(logits, ref_logits, atol=tol, rtol=tol))
            ok &= bool(jnp.allclose(value, ref_value, atol=tol, rtol=tol))

    assert ok
    print("KERNEL_OK")
</pallas_src>

<mosaic_0001>
module attributes {stable_mosaic.version = 11 : i64} {
  func.func @policy_mlp_kernel(%arg0: i32, %arg1: memref<64x24xf32, #tpu.memory_space<vmem>>, %arg2: memref<24x128xf32, #tpu.memory_space<vmem>>, %arg3: memref<1x128xf32, #tpu.memory_space<vmem>>, %arg4: memref<128x128xf32, #tpu.memory_space<vmem>>, %arg5: memref<1x128xf32, #tpu.memory_space<vmem>>, %arg6: memref<128x128xf32, #tpu.memory_space<vmem>>, %arg7: memref<1x128xf32, #tpu.memory_space<vmem>>, %arg8: memref<64x128xf32, #tpu.memory_space<vmem>>) attributes {dimension_semantics = [#tpu.dimension_semantics<parallel>], iteration_bounds = array<i64: 4>, scalar_prefetch = 0 : i64, scratch_operands = 0 : i64, tpu.core_type = #tpu.core_type<tc>, window_params = [{transform_indices = @transform_0, window_bounds = array<i64: 64, 24>}, {pipeline_mode = #tpu.pipeline_mode<synchronous>, transform_indices = @transform_1, window_bounds = array<i64: 24, 128>}, {pipeline_mode = #tpu.pipeline_mode<synchronous>, transform_indices = @transform_2, window_bounds = array<i64: 1, 128>}, {pipeline_mode = #tpu.pipeline_mode<synchronous>, transform_indices = @transform_3, window_bounds = array<i64: 128, 128>}, {pipeline_mode = #tpu.pipeline_mode<synchronous>, transform_indices = @transform_4, window_bounds = array<i64: 1, 128>}, {pipeline_mode = #tpu.pipeline_mode<synchronous>, transform_indices = @transform_5, window_bounds = array<i64: 128, 128>}, {pipeline_mode = #tpu.pipeline_mode<synchronous>, transform_indices = @transform_6, window_bounds = array<i64: 1, 128>}, {transform_indices = @transform_7, window_bounds = array<i64: 64, 128>}]} {
    %c0 = arith.constant 0 : index
    %c0_0 = arith.constant 0 : index
    %0 = vector.load %arg1[%c0, %c0_0] : memref<64x24xf32, #tpu.memory_space<vmem>>, vector<64x24xf32>
    %c0_1 = arith.constant 0 : index
    %c0_2 = arith.constant 0 : index
    %1 = vector.load %arg2[%c0_1, %c0_2] : memref<24x128xf32, #tpu.memory_space<vmem>>, vector<24x128xf32>
    %cst = arith.constant dense<0.000000e+00> : vector<64x128xf32>
    %2 = tpu.matmul %0, %1, %cst {dimension_numbers = #tpu.dot_dimension_numbers<[1], [0], [0], [1], [0, 0, 1, 1], [], []>} : vector<64x24xf32>, vector<24x128xf32>, vector<64x128xf32> -> vector<64x128xf32>
    %c0_3 = arith.constant 0 : index
    %c0_4 = arith.constant 0 : index
    %3 = vector.load %arg3[%c0_3, %c0_4] : memref<1x128xf32, #tpu.memory_space<vmem>>, vector<1x128xf32>
    %4 = vector.broadcast %3 : vector<1x128xf32> to vector<64x128xf32>
    %5 = arith.addf %2, %4 : vector<64x128xf32>
    %6 = math.tanh %5 : vector<64x128xf32>
    %c0_5 = arith.constant 0 : index
    %c0_6 = arith.constant 0 : index
    %7 = vector.load %arg4[%c0_5, %c0_6] : memref<128x128xf32, #tpu.memory_space<vmem>>, vector<128x128xf32>
    %cst_7 = arith.constant dense<0.000000e+00> : vector<64x128xf32>
    %8 = tpu.matmul %6, %7, %cst_7 {dimension_numbers = #tpu.dot_dimension_numbers<[1], [0], [0], [1], [0, 0, 1, 1], [], []>} : vector<64x128xf32>, vector<128x128xf32>, vector<64x128xf32> -> vector<64x128xf32>
    %c0_8 = arith.constant 0 : index
    %c0_9 = arith.constant 0 : index
    %9 = vector.load %arg5[%c0_8, %c0_9] : memref<1x128xf32, #tpu.memory_space<vmem>>, vector<1x128xf32>
    %10 = vector.broadcast %9 : vector<1x128xf32> to vector<64x128xf32>
    %11 = arith.addf %8, %10 : vector<64x128xf32>
    %12 = math.tanh %11 : vector<64x128xf32>
    %c0_10 = arith.constant 0 : index
    %c0_11 = arith.constant 0 : index
    %13 = vector.load %arg6[%c0_10, %c0_11] : memref<128x128xf32, #tpu.memory_space<vmem>>, vector<128x128xf32>
    %cst_12 = arith.constant dense<0.000000e+00> : vector<64x128xf32>
    %14 = tpu.matmul %12, %13, %cst_12 {dimension_numbers = #tpu.dot_dimension_numbers<[1], [0], [0], [1], [0, 0, 1, 1], [], []>} : vector<64x128xf32>, vector<128x128xf32>, vector<64x128xf32> -> vector<64x128xf32>
    %c0_13 = arith.constant 0 : index
    %c0_14 = arith.constant 0 : index
    %15 = vector.load %arg7[%c0_13, %c0_14] : memref<1x128xf32, #tpu.memory_space<vmem>>, vector<1x128xf32>
    %16 = vector.broadcast %15 : vector<1x128xf32> to vector<64x128xf32>
    %17 = arith.addf %14, %16 : vector<64x128xf32>
    %c0_15 = arith.constant 0 : index
    %c0_16 = arith.constant 0 : index
    %18 = vector.load %arg8[%c0_15, %c0_16] : memref<64x128xf32, #tpu.memory_space<vmem>>, vector<64x128xf32>
    tpu.vector_store %arg8[%c0_15, %c0_16], %17 {strides = array<i32>} : memref<64x128xf32, #tpu.memory_space<vmem>>, vector<64x128xf32>,
    return
  }
  func.func @transform_0(%arg0: i32) -> (i32, i32) {
    %c0_i32 = arith.constant 0 : i32
    %c0_i32_0 = arith.constant 0 : i32
    return %arg0, %c0_i32 : i32, i32
  }
  func.func @transform_1(%arg0: i32) -> (i32, i32) {
    %c0_i32 = arith.constant 0 : i32
    %c0_i32_0 = arith.constant 0 : i32
    %c0_i32_1 = arith.constant 0 : i32
    return %c0_i32, %c0_i32_0 : i32, i32
  }
  func.func @transform_2(%arg0: i32) -> (i32, i32) {
    %c0_i32 = arith.constant 0 : i32
    %c0_i32_0 = arith.constant 0 : i32
    %c0_i32_1 = arith.constant 0 : i32
    return %c0_i32, %c0_i32_0 : i32, i32
  }
  func.func @transform_3(%arg0: i32) -> (i32, i32) {
    %c0_i32 = arith.constant 0 : i32
    %c0_i32_0 = arith.constant 0 : i32
    %c0_i32_1 = arith.constant 0 : i32
    return %c0_i32, %c0_i32_0 : i32, i32
  }
  func.func @transform_4(%arg0: i32) -> (i32, i32) {
    %c0_i32 = arith.constant 0 : i32
    %c0_i32_0 = arith.constant 0 : i32
    %c0_i32_1 = arith.constant 0 : i32
    return %c0_i32, %c0_i32_0 : i32, i32
  }
  func.func @transform_5(%arg0: i32) -> (i32, i32) {
    %c0_i32 = arith.constant 0 : i32
    %c0_i32_0 = arith.constant 0 : i32
    %c0_i32_1 = arith.constant 0 : i32
    return %c0_i32, %c0_i32_0 : i32, i32
  }
  func.func @transform_6(%arg0: i32) -> (i32, i32) {
    %c0_i32 = arith.constant 0 : i32
    %c0_i32_0 = arith.constant 0 : i32
    %c0_i32_1 = arith.constant 0 : i32
    return %c0_i32, %c0_i32_0 : i32, i32
  }
  func.func @transform_7(%arg0: i32) -> (i32, i32) {
    %c0_i32 = arith.constant 0 : i32
    %c0_i32_0 = arith.constant 0 : i32
    return %arg0, %c0_i32 : i32, i32
  }
}

</mosaic_0001>

<bundles_post_ra>
// kernel: policy_forward.1
= control target key start
LH: loop header
LB: loop body
LE: loop exit
PB: predicated region body
PF: predicated region fallthrough
CT: control target
= control target key end

     0   :  { %s1109_s24 = smov 0   ;;  %s1255_s0 = inlined_call_operand.vmem [shape: f32[256,24], index: 0, kind: input, shape index: {}]   ;;  %s1256_s1 = inlined_call_operand.vmem [shape: f32[24,128], index: 1, kind: input, shape index: {}]   ;;  %s1257_s2 = inlined_call_operand.vmem [shape: f32[1,128], index: 2, kind: input, shape index: {}]   ;;  %s1258_s3 = inlined_call_operand.vmem [shape: f32[128,128], index: 3, kind: input, shape index: {}]   ;;  %s1259_s4 = inlined_call_operand.vmem [shape: f32[1,128], index: 4, kind: input, shape index: {}]   ;;  %s1260_s5 = inlined_call_operand.vmem [shape: f32[128,128], index: 5, kind: input, shape index: {}]   ;;  %s1261_s6 = inlined_call_operand.vmem [shape: f32[1,128], index: 6, kind: input, shape index: {}]   ;;  %s1262_s7 = inlined_call_operand.vmem [shape: f32[256,128], index: 7, kind: output, shape index: {}]  }
   0x1 LB: > { %s766_s25 = sadd.s32 4294967295, %s1067_s24   ;;  %p770_p0 = scmp.ge.s32.totalorder %s1067_s24, 1  ;;  %s1067_s24 = sphi %s1109_s24, %s17_s24  }
   0x2   : > { %p238_p1 = scmp.lt.s32.totalorder %s1067_s24, 5 }
   0x4   : > { %p239_p2 = pnand %p770_p0, %p238_p1 }
   0x5   : > { %v290_v0 = vld [vmem:[%s1256_s1] sm:$0xff] (!%p239_p2)  ;;  %v291_v1 = vld [vmem:[%s1256_s1 + $0x8] sm:$0xff] (!%p239_p2)  ;;  %s771_s30 = sshll.u32 (!%p239_p2), %s766_s25, 3  ;;  %v440_v5 = vld [vmem:[%s1258_s3 + $0x10] sm:$0xff] (!%p239_p2)  ;;  %vm300_vm0 = vcmask (!%p239_p2), 195584  }
   0x6   : > { %242 = sbr.rel (%p239_p2) target bundleno = 700 (0x2bc), region = 48  ;;  %v953_v2 = vpack.c.bf16 (!%p239_p2), %v291_v1, %v290_v0  ;;  %p271_p3 = scmp.lt.s32.totalorder (!%p239_p2), %s771_s30, 31  ;;  %v438_v3 = vld [vmem:[%s1258_s3] sm:$0xff] (!%p239_p2)  ;;  %v439_v4 = vld [vmem:[%s1258_s3 + $0x8] sm:$0xff] (!%p239_p2)  ;;  %v292_v6 = vld [vmem:[%s1256_s1 + $0x10] sm:$0xff] (!%p239_p2) }
   0x7   : > { %v957_v7 = vpack.c.bf16 (!%p239_p2), %v439_v4, %v438_v3  ;;  %v441_v8 = vld [vmem:[%s1258_s3 + $0x18] sm:$0xff] (!%p239_p2)  ;;  %v442_v10 = vld [vmem:[%s1258_s3 + $0x20] sm:$0xff] (!%p239_p2)  ;;  %v443_v11 = vld [vmem:[%s1258_s3 + $0x28] sm:$0xff] (!%p239_p2) }
   0x8   : > { %954 = vmatprep.subr.bf16.mxu0 (!%p239_p2), %v953_v2  ;;  %v961_v9 = vpack.c.bf16 (!%p239_p2), %v441_v8, %v440_v5  ;;  %v965_v12 = vpack.c.bf16 (!%p239_p2), %v443_v11, %v442_v10  ;;  %v444_v13 = vld [vmem:[%s1258_s3 + $0x30] sm:$0xff] (!%p239_p2)  ;;  %v445_v14 = vld [vmem:[%s1258_s3 + $0x38] sm:$0xff] (!%p239_p2)  ;;  %v446_v24 = vld [vmem:[%s1258_s3 + $0x40] sm:$0xff] (!%p239_p2) }
   0x9   : > { %956 = vmatpush3.bf16.msra.mxu0 (!%p239_p2), %v953_v2  ;;  %958 = vmatprep.subr.bf16.mxu1 (!%p239_p2), %v957_v7  ;;  %v969_v19 = vpack.c.bf16 (!%p239_p2), %v445_v14, %v444_v13  ;;  %v447_v25 = vld [vmem:[%s1258_s3 + $0x48] sm:$0xff] (!%p239_p2)  ;;  %v448_v27 = vld [vmem:[%s1258_s3 + $0x50] sm:$0xff] (!%p239_p2)  ;;  %v449_v28 = vld [vmem:[%s1258_s3 + $0x58] sm:$0xff] (!%p239_p2) }
   0xa   : > { %851 = vmatprep.subr.mxu0 (!%p239_p2), %v292_v6  ;;  %960 = vmatpush3.bf16.msra.mxu1 (!%p239_p2), %v957_v7  ;;  %v973_v26 = vpack.c.bf16 (!%p239_p2), %v447_v25, %v446_v24  ;;  %v977_v29 = vpack.c.bf16 (!%p239_p2), %v449_v28, %v448_v27  ;;  %v450_v30 = vld [vmem:[%s1258_s3 + $0x60] sm:$0xff] (!%p239_p2)  ;;  %v451_v31 = vld [vmem:[%s1258_s3 + $0x68] sm:$0xff] (!%p239_p2)  ;;  %v452_v33 = vld [vmem:[%s1258_s3 + $0x70] sm:$0xff] (!%p239_p2) }
   0xb   : > { %962 = vmatprep.subr.bf16.mxu1 (!%p239_p2), %v961_v9  ;;  %v981_v32 = vpack.c.bf16 (!%p239_p2), %v451_v31, %v450_v30  ;;  %v453_v34 = vld [vmem:[%s1258_s3 + $0x78] sm:$0xff] (!%p239_p2)  ;;  %v574_v36 = vld [vmem:[%s1260_s5] sm:$0xff] (!%p239_p2)  ;;  %v575_v37 = vld [vmem:[%s1260_s5 + $0x8] sm:$0xff] (!%p239_p2) }
   0xc   : > { %v985_v35 = vpack.c.bf16 (!%p239_p2), %v453_v34, %v452_v33  ;;  %v576_v38 = vld [vmem:[%s1260_s5 + $0x10] sm:$0xff] (!%p239_p2)  ;;  %v989_v39 = vpack.c.bf16 (!%p239_p2), %v575_v37, %v574_v36  ;;  %v577_v40 = vld [vmem:[%s1260_s5 + $0x18] sm:$0xff] (!%p239_p2)  ;;  %v578_v42 = vld [vmem:[%s1260_s5 + $0x20] sm:$0xff] (!%p239_p2) }
   0xd   : > { %s1264_s30 = smov (!%p271_p3, %s771_s30), 31  ;;  %852 = vmatpush3.msra.mxu0 %v292_v6  ;;  %v993_v41 = vpack.c.bf16 %v577_v40, %v576_v38  ;;  %v579_v43 = vld [vmem:[%s1260_s5 + $0x28] sm:$0xff]  ;;  %v580_v45 = vld [vmem:[%s1260_s5 + $0x30] sm:$0xff]  ;;  %v581_v46 = vld [vmem:[%s1260_s5 + $0x38] sm:$0xff] }
   0xe   : > { %s772_s22 = sshll.u32 %s1264_s30, 3  ;;  %964 = vmatpush3.bf16.msra.mxu1 %v961_v9  ;;  %990 = vmatprep.subr.bf16.mxu0 %v989_v39  ;;  %v997_v44 = vpack.c.bf16 %v579_v43, %v578_v42  ;;  %v1001_v47 = vpack.c.bf16 %v581_v46, %v580_v45  ;;  %v775_v48 = vld [vmem:[%s1257_s2] ss:$0 sm:$0xff]  ;;  %v583_v10 = vld [vmem:[%s1260_s5 + $0x48] sm:$0xff]  ;;  %v585_v13 = vld [vmem:[%s1260_s5 + $0x58] sm:$0xff] }
   0xf   : > { %s274_s26 = scalar_lea.vmem %s1255_s0, %s772_s22  ;;  %966 = vmatprep.subr.bf16.mxu1 %v965_v12  ;;  %v582_v9 = vld [vmem:[%s1260_s5 + $0x40] sm:$0xff]  ;;  %s280_s27 = scalar_lea.vmem %s1262_s7, %s772_s22 }
  0x10   : > { %v282_v15 = vld [vmem:[%s274_s26] sm:$0xff]  ;;  %v283_v16 = vld [vmem:[%s274_s26 + $0x8] sm:$0xff]  ;;  %v284_v17 = vld [vmem:[%s274_s26 + $0x10] sm:$0xff]  ;;  %v1005_v11 = vpack.c.bf16 %v583_v10, %v582_v9 }
  0x11   : > { %853 = vmatprep.mubr.msk.f32.mxu0 %vm300_vm0, %v282_v15  ;;  %v285_v18 = vld [vmem:[%s274_s26 + $0x18] sm:$0xff]  ;;  %v286_v20 = vld [vmem:[%s274_s26 + $0x20] sm:$0xff]  ;;  %v287_v21 = vld [vmem:[%s274_s26 + $0x28] sm:$0xff] }
  0x12   : > { %854 = vmatmul.mubr.msk.f32.vlgmr.msra.gmra.mrb[0].mxu0 %vm300_vm0, %v283_v16  ;;  %968 = vmatpush3.bf16.msra.mxu1 %v965_v12  ;;  %v288_v22 = vld [vmem:[%s274_s26 + $0x30] sm:$0xff]  ;;  %v289_v23 = vld [vmem:[%s274_s26 + $0x38] sm:$0xff]  ;;  %v586_v15 = vld [vmem:[%s1260_s5 + $0x60] sm:$0xff] }
  0x13   : > { %856 = vmatprep.mubr.msk.f32.mxu0 %vm300_vm0, %v284_v17  ;;  %970 = vmatprep.subr.bf16.mxu1 %v969_v19  ;;  %v584_v12 = vld [vmem:[%s1260_s5 + $0x50] sm:$0xff]  ;;  %v587_v16 = vld [vmem:[%s1260_s5 + $0x68] sm:$0xff]  ;;  %v785_v46 = vld [vmem:[%s1261_s6] ss:$0 sm:$0xff] }
  0x14   : > { %992 = vmatpush3.bf16.msra.mxu0 %v989_v39  ;;  %v1009_v14 = vpack.c.bf16 %v585_v13, %v584_v12  ;;  %v1013_v17 = vpack.c.bf16 %v587_v16, %v586_v15 }
  0x15   : > { %994 = vmatprep.subr.bf16.mxu0 %v993_v41 }
  0x16   : > { %857 = vmatmul.mubr.msk.f32.gmra.mrb[2].mxu0 %vm300_vm0, %v285_v18  ;;  %972 = vmatpush3.bf16.msra.mxu1 %v969_v19  ;;  %v588_v18 = vld [vmem:[%s1260_s5 + $0x70] sm:$0xff]  ;;  %v589_v19 = vld [vmem:[%s1260_s5 + $0x78] sm:$0xff] }
  0x17   : > { %859 = vmatprep.mubr.msk.f32.mxu0 %vm300_vm0, %v286_v20  ;;  %974 = vmatprep.subr.bf16.mxu1 %v973_v26  ;;  %v1017_v20 = vpack.c.bf16 %v589_v19, %v588_v18 }
  0x18   : > { %996 = vmatpush3.bf16.msra.mxu0 %v993_v41 }
  0x19   : > { %998 = vmatprep.subr.bf16.mxu0 %v997_v44 }
  0x1a   : > { %860 = vmatmul.mubr.msk.f32.gmra.mrb[4].mxu0 %vm300_vm0, %v287_v21  ;;  %976 = vmatpush3.bf16.msra.mxu1 %v973_v26  ;;  %v784_v21 = vld [vmem:[%s1259_s4] ss:$0 sm:$0xff] }
  0x1b   : > { %862 = vmatprep.mubr.msk.f32.mxu0 %vm300_vm0, %v288_v22  ;;  %978 = vmatprep.subr.bf16.mxu1 %v977_v29 }
  0x1c   : > { %1000 = vmatpush3.bf16.msra.mxu0 %v997_v44 }
  0x1d   : > { %1002 = vmatprep.subr.bf16.mxu0 %v1001_v47 }
  0x1e   : > { %863 = vmatmul.mubr.msk.f32.gmra.mrb[6].mxu0 %vm300_vm0, %v289_v23  ;;  %980 = vmatpush3.bf16.msra.mxu1 %v977_v29 }
  0x1f   : > { %982 = vmatprep.subr.bf16.mxu1 %v981_v32 }
  0x20   : > { %1004 = vmatpush3.bf16.msra.mxu0 %v1001_v47 }
  0x21   : > { %1006 = vmatprep.subr.bf16.mxu0 %v1005_v11 }
  0x22   : > { %984 = vmatpush3.bf16.msra.mxu1 %v981_v32 }
  0x23   : > { %986 = vmatprep.subr.bf16.mxu1 %v985_v35 }
  0x24   : > { %1008 = vmatpush3.bf16.msra.mxu0 %v1005_v11 }
  0x25   : > { %1010 = vmatprep.subr.bf16.mxu0 %v1009_v14 }
  0x26   : > { %988 = vmatpush3.bf16.msra.mxu1 %v985_v35 }
  0x28   : > { %1012 = vmatpush3.bf16.msra.mxu0 %v1009_v14 }
  0x29   : > { %1014 = vmatprep.subr.bf16.mxu0 %v1013_v17 }
  0x2c   : > { %1016 = vmatpush3.bf16.msra.mxu0 %v1013_v17 }
  0x2d   : > { %1018 = vmatprep.subr.bf16.mxu0 %v1017_v20 }
  0x30   : > { %1020 = vmatpush3.bf16.msra.mxu0 %v1017_v20 }
  0xe5   : > { %v855_v49 = vpop.f32.mrb[0].mxu0 }
  0xe6   : > { %v397_v50 = vadd.f32 %v855_v49, %v775_v48  ;;  %v391_v51 = vpop.f32.mrb[1].mxu0 }
  0xe7   : > { %v392_v52 = vadd.f32 %v775_v48, %v391_v51 }
  0xe9   : > { %1029 = vtanh.f32 %v392_v52  ;;  %v858_v53 = vpop.f32.mrb[2].mxu0 }
  0xea   : > { %1031 = vtanh.f32 %v397_v50  ;;  %v407_v54 = vadd.f32 %v858_v53, %v775_v48  ;;  %v401_v55 = vpop.f32.mrb[3].mxu0 }
  0xeb   : > { %v402_v56 = vadd.f32 %v775_v48, %v401_v55 }
  0xed   : > { %1033 = vtanh.f32 %v402_v56  ;;  %v861_v57 = vpop.f32.mrb[4].mxu0 }
  0xee   : > { %1035 = vtanh.f32 %v407_v54  ;;  %v417_v58 = vadd.f32 %v861_v57, %v775_v48  ;;  %v411_v59 = vpop.f32.mrb[5].mxu0 }
  0xef   : > { %v412_v60 = vadd.f32 %v775_v48, %v411_v59 }
  0xf1   : > { %1037 = vtanh.f32 %v412_v60  ;;  %v864_v61 = vpop.f32.mrb[6].mxu0 }
  0xf2   : > { %1039 = vtanh.f32 %v417_v58  ;;  %v427_v62 = vadd.f32 %v864_v61, %v775_v48  ;;  %v421_v63 = vpop.f32.mrb[7].mxu0 }
  0xf3   : > { %v1030_v0 = vpop.eup %1029  ;;  %v422_v1 = vadd.f32 %v775_v48, %v421_v63 }
  0xf4   : > { %v1032_v2 = vpop.eup %1031  ;;  %897 = vmatprep.mubr.f32.mxu1 %v1030_v0 }
  0xf5   : > { %1041 = vtanh.f32 %v422_v1  ;;  %898 = vmatmul.mubr.f32.vlgmr.msra.gmra.mrb[0].mxu1 %v1032_v2 }
  0xf6   : > { %1043 = vtanh.f32 %v427_v62 }
  0xf7   : > { %v1034_v3 = vpop.eup %1033 }
  0xf8   : > { %v1036_v4 = vpop.eup %1035  ;;  %900 = vmatprep.mubr.f32.mxu1 %v1034_v3 }
  0xf9   : > { %901 = vmatmul.mubr.f32.gmra.mrb[2].mxu1 %v1036_v4 }
  0xfb   : > { %v1038_v5 = vpop.eup %1037 }
  0xfc   : > { %v1040_v6 = vpop.eup %1039  ;;  %903 = vmatprep.mubr.f32.mxu1 %v1038_v5 }
  0xfd   : > { %904 = vmatmul.mubr.f32.gmra.mrb[4].mxu1 %v1040_v6 }
  0xff   : > { %v1042_v7 = vpop.eup %1041 }
 0x100   : > { %v1044_v8 = vpop.eup %1043  ;;  %906 = vmatprep.mubr.f32.mxu1 %v1042_v7 }
 0x101   : > { %907 = vmatmul.mubr.f32.gmra.mrb[6].mxu1 %v1044_v8 }
 0x1c8   : > { %v899_v22 = vpop.f32.mrb[0].mxu1 }
 0x1c9   : > { %v533_v23 = vadd.f32 %v899_v22, %v784_v21  ;;  %v527_v24 = vpop.f32.mrb[1].mxu1 }
 0x1ca   : > { %v528_v25 = vadd.f32 %v784_v21, %v527_v24 }
 0x1cc   : > { %1045 = vtanh.f32 %v528_v25  ;;  %v902_v26 = vpop.f32.mrb[2].mxu1 }
 0x1cd   : > { %1047 = vtanh.f32 %v533_v23  ;;  %v543_v27 = vadd.f32 %v902_v26, %v784_v21  ;;  %v537_v28 = vpop.f32.mrb[3].mxu1 }
 0x1ce   : > { %v538_v29 = vadd.f32 %v784_v21, %v537_v28 }
 0x1d0   : > { %1049 = vtanh.f32 %v538_v29  ;;  %v905_v30 = vpop.f32.mrb[4].mxu1 }
 0x1d1   : > { %1051 = vtanh.f32 %v543_v27  ;;  %v553_v31 = vadd.f32 %v905_v30, %v784_v21  ;;  %v547_v32 = vpop.f32.mrb[5].mxu1 }
 0x1d2   : > { %v548_v33 = vadd.f32 %v784_v21, %v547_v32 }
 0x1d4   : > { %1053 = vtanh.f32 %v548_v33  ;;  %v908_v34 = vpop.f32.mrb[6].mxu1 }
 0x1d5   : > { %1055 = vtanh.f32 %v553_v31  ;;  %v563_v35 = vadd.f32 %v908_v34, %v784_v21  ;;  %v557_v36 = vpop.f32.mrb[7].mxu1 }
 0x1d6   : > { %v1046_v37 = vpop.eup %1045  ;;  %v558_v38 = vadd.f32 %v784_v21, %v557_v36 }
 0x1d7   : > { %v1048_v39 = vpop.eup %1047  ;;  %941 = vmatprep.mubr.f32.mxu0 %v1046_v37 }
 0x1d8   : > { %1057 = vtanh.f32 %v558_v38  ;;  %942 = vmatmul.mubr.f32.vlgmr.msra.gmra.mrb[8].mxu0 %v1048_v39 }
 0x1d9   : > { %1059 = vtanh.f32 %v563_v35 }
 0x1da   : > { %v1050_v40 = vpop.eup %1049 }
 0x1db   : > { %v1052_v41 = vpop.eup %1051  ;;  %944 = vmatprep.mubr.f32.mxu0 %v1050_v40 }
 0x1dc   : > { %945 = vmatmul.mubr.f32.gmra.mrb[10].mxu0 %v1052_v41 }
 0x1de   : > { %v1054_v42 = vpop.eup %1053 }
 0x1df   : > { %v1056_v43 = vpop.eup %1055  ;;  %947 = vmatprep.mubr.f32.mxu0 %v1054_v42 }
 0x1e0   : > { %948 = vmatmul.mubr.f32.gmra.mrb[12].mxu0 %v1056_v43 }
 0x1e2   : > { %v1058_v44 = vpop.eup %1057 }
 0x1e3   : > { %v1060_v45 = vpop.eup %1059  ;;  %950 = vmatprep.mubr.f32.mxu0 %v1058_v44 }
 0x1e4   : > { %951 = vmatmul.mubr.f32.gmra.mrb[14].mxu0 %v1060_v45 }
 0x2ab   : > { %v943_v47 = vpop.f32.mrb[8].mxu0 }
 0x2ac   : > { %v669_v48 = vadd.f32 %v943_v47, %v785_v46  ;;  %v663_v49 = vpop.f32.mrb[9].mxu0 }
 0x2ad   : > { %v664_v50 = vadd.f32 %v785_v46, %v663_v49 }
 0x2ae   : > { %703 = vst [vmem:[%s280_s27 + $0x8] sm:$0xff] %v669_v48 }
 0x2af   : > { %702 = vst [vmem:[%s280_s27] sm:$0xff] %v664_v50  ;;  %v946_v51 = vpop.f32.mrb[10].mxu0 }
 0x2b0   : > { %v679_v52 = vadd.f32 %v946_v51, %v785_v46  ;;  %v673_v53 = vpop.f32.mrb[11].mxu0 }
 0x2b1   : > { %v674_v54 = vadd.f32 %v785_v46, %v673_v53 }
 0x2b2   : > { %705 = vst [vmem:[%s280_s27 + $0x18] sm:$0xff] %v679_v52 }
 0x2b3   : > { %704 = vst [vmem:[%s280_s27 + $0x10] sm:$0xff] %v674_v54  ;;  %v949_v55 = vpop.f32.mrb[12].mxu0 }
 0x2b4   : > { %v689_v56 = vadd.f32 %v949_v55, %v785_v46  ;;  %v683_v57 = vpop.f32.mrb[13].mxu0 }
 0x2b5   : > { %v684_v58 = vadd.f32 %v785_v46, %v683_v57 }
 0x2b6   : > { %707 = vst [vmem:[%s280_s27 + $0x28] sm:$0xff] %v689_v56 }
 0x2b7   : > { %706 = vst [vmem:[%s280_s27 + $0x20] sm:$0xff] %v684_v58  ;;  %v952_v59 = vpop.f32.mrb[14].mxu0 }
 0x2b8   : > { %v699_v60 = vadd.f32 %v952_v59, %v785_v46  ;;  %v693_v61 = vpop.f32.mrb[15].mxu0 }
 0x2b9   : > { %v694_v62 = vadd.f32 %v785_v46, %v693_v61 }
 0x2ba   : > { %709 = vst [vmem:[%s280_s27 + $0x38] sm:$0xff] %v699_v60 }
 0x2bb   : > { %708 = vst [vmem:[%s280_s27 + $0x30] sm:$0xff] %v694_v62 }
 0x2bc PF: > { %s17_s24 = sadd.s32 1, %s1067_s24  }
 0x2bd   : > { %p14_p4 = scmp.ge.s32.totalorder %s17_s24, 6  }
 0x2bf   :  { %16 = sbr.rel (!%p14_p4) target bundleno = 1 (0x1), region = 78 }

</bundles_post_ra>
